<compile_context>
chip_gen: v7x
topology: tpu7x:2x2x1
jax: 0.10.0
libtpu: 0.0.40
codegen_flags: <defaults>
</compile_context>

<pallas_src>
import jax
import jax.numpy as jnp
from jax.experimental import pallas as pl
from jax.experimental.pallas import tpu as pltpu


# ----------------------------------------------------------------------------
# Kernel
# ----------------------------------------------------------------------------
def mlpnn_kernel(x_ref, w1_ref, w2_ref, w3_ref, w4_ref, b_ref, o_ref):
    # Epilogue math (bias add, relu, tanh) stays in f32 (v5e VPU/EUP have no bf16
    # path); matmul inputs follow the stored weight dtype with f32 MXU accumulation.
    H_p = w1_ref.shape[1]
    D_out_p = w4_ref.shape[1]

    x = x_ref[...]

    h = jnp.maximum(x, 0.0)
    h = jnp.dot(h.astype(w1_ref.dtype), w1_ref[...],
                preferred_element_type=jnp.float32) + b_ref[0:1, 0:H_p]

    h = jnp.maximum(h, 0.0)
    h = jnp.dot(h.astype(w2_ref.dtype), w2_ref[...],
                preferred_element_type=jnp.float32) + b_ref[1:2, 0:H_p]

    h = jnp.maximum(h, 0.0)
    h = jnp.dot(h.astype(w3_ref.dtype), w3_ref[...],
                preferred_element_type=jnp.float32) + b_ref[2:3, 0:H_p]

    h = jnp.tanh(h)
    # `* 2` already folded into W4 / b4 at prep time.
    y = jnp.dot(h.astype(w4_ref.dtype), w4_ref[...],
                preferred_element_type=jnp.float32) + b_ref[3:4, 0:D_out_p]
    o_ref[...] = y.astype(o_ref.dtype)


# ----------------------------------------------------------------------------
# Parameter prep (one-time): pad feature dims to 128 lanes, fold *2, cast weights.
# ----------------------------------------------------------------------------
def _round_up(v, m):
    return (v + m - 1) // m * m


def prepare_params(params, *, matmul_dtype=jnp.bfloat16):
    """params: W1..W4 as (in, out), b1..b4 as (1, out), all f32 (torch layout^T).

    Returns (prepped, d_out) where prepped has bf16 (default) lane-padded weights
    W1..W4 and a single stacked f32 bias operand B of shape (8, P), rows 0..3 used.
    """
    D_in, H = params["W1"].shape
    D_out = params["W4"].shape[1]
    H_p = _round_up(H, 128)
    D_out_p = _round_up(D_out, 128)
    P = max(H_p, D_out_p)

    def padw(W, rows, cols):
        return jnp.pad(W, ((0, rows - W.shape[0]),
                           (0, cols - W.shape[1]))).astype(matmul_dtype)

    # Biases stay f32 (added after the f32-accumulated dot); padded lanes are 0.
    b_stack = jnp.zeros((8, P), jnp.float32)
    b_stack = b_stack.at[0, :H].set(params["b1"][0].astype(jnp.float32))
    b_stack = b_stack.at[1, :H].set(params["b2"][0].astype(jnp.float32))
    b_stack = b_stack.at[2, :H].set(params["b3"][0].astype(jnp.float32))
    b_stack = b_stack.at[3, :D_out].set((params["b4"][0] * 2.0).astype(jnp.float32))

    prepped = dict(
        W1=padw(params["W1"], D_in, H_p),
        W2=padw(params["W2"], H_p, H_p),
        W3=padw(params["W3"], H_p, H_p),
        # Fold the final `* 2` into the last layer (exact even in bf16).
        W4=padw(params["W4"] * 2.0, H_p, D_out_p),
        B=b_stack,
    )
    return prepped, D_out


# ----------------------------------------------------------------------------
# Batch tile selection:
#   * multiples of 8 rows, capped at 1024 (bigger buys <1% past the roofline),
#   * >= 2 grid steps whenever B >= 16 (v7x dual-TC sharding),
#   * tiny batches get one padded tile.
# ----------------------------------------------------------------------------
def _pick_tile_b(B):
    if B < 16:
        return _round_up(max(B, 1), 8)
    half = _round_up(-(-B // 2), 8)          # ceil(B/2) rounded up to 8
    return min(1024, half)


# ----------------------------------------------------------------------------
# Wrapper
# ----------------------------------------------------------------------------
def mlpnn_forward(x, prepped, d_out, *, tile_b=None, out_dtype=None, unpad=True):
    """x: (B, D_in) f32.  prepped: output of prepare_params.

    If unpad=True returns (B, d_out); if unpad=False returns the padded
    (B_pad, D_out_p) slab in out_dtype (preferred inside time-stepping loops —
    avoids the extra HBM slice copy; slice only at the true boundary).
    """
    B, D_in = x.shape
    D_out_p = prepped["W4"].shape[1]
    out_dtype = x.dtype if out_dtype is None else out_dtype

    if tile_b is None:
        tile_b = _pick_tile_b(B)
    assert tile_b % 8 == 0, "tile_b must be a multiple of 8 (f32 sublanes)"

    grid_b = -(-B // tile_b)                 # cdiv
    B_pad = grid_b * tile_b
    if B_pad != B:
        x = jnp.pad(x, ((0, B_pad - B), (0, 0)))

    full = lambda shape: pl.BlockSpec(shape, lambda i: (0,) * len(shape))

    out_padded = pl.pallas_call(
        mlpnn_kernel,
        out_shape=jax.ShapeDtypeStruct((B_pad, D_out_p), out_dtype),
        grid_spec=pltpu.PrefetchScalarGridSpec(
            num_scalar_prefetch=0,
            grid=(grid_b,),
            in_specs=[
                pl.BlockSpec((tile_b, D_in), lambda i: (i, 0)),   # x tile
                full(prepped["W1"].shape),
                full(prepped["W2"].shape),
                full(prepped["W3"].shape),
                full(prepped["W4"].shape),
                full(prepped["B"].shape),                         # stacked biases
            ],
            # Lane-dense output tile (last dim = multiple of 128 -> unmasked vst).
            out_specs=pl.BlockSpec((tile_b, D_out_p), lambda i: (i, 0)),
        ),
        compiler_params=pltpu.CompilerParams(
            dimension_semantics=("parallel",)),
    )(x,
      prepped["W1"], prepped["W2"], prepped["W3"], prepped["W4"],
      prepped["B"])

    if unpad:
        return out_padded[:B, :d_out]
    return out_padded


# ----------------------------------------------------------------------------
# Reference + synthetic init (mimics torch.nn.Linear uniform(+-1/sqrt(fan_in)))
# ----------------------------------------------------------------------------
def init_params(key, D_in, H, D_out):
    ks = jax.random.split(key, 8)

    def lin(kw, kb, fan_in, fan_out):
        bound = 1.0 / jnp.sqrt(fan_in)
        W = jax.random.uniform(kw, (fan_in, fan_out), jnp.float32, -bound, bound)
        b = jax.random.uniform(kb, (1, fan_out), jnp.float32, -bound, bound)
        return W, b

    W1, b1 = lin(ks[0], ks[1], D_in, H)
    W2, b2 = lin(ks[2], ks[3], H, H)
    W3, b3 = lin(ks[4], ks[5], H, H)
    W4, b4 = lin(ks[6], ks[7], H, D_out)
    return dict(W1=W1, b1=b1, W2=W2, b2=b2, W3=W3, b3=b3, W4=W4, b4=b4)


def mlpnn_ref(x, p):
    h = jnp.maximum(x, 0.0) @ p["W1"] + p["b1"]
    h = jnp.maximum(h, 0.0) @ p["W2"] + p["b2"]
    h = jnp.maximum(h, 0.0) @ p["W3"] + p["b3"]
    return (jnp.tanh(h) @ p["W4"] + p["b4"]) * 2.0


if __name__ == "__main__":
    # reaction_diffusion.py uses n = 32 grid points -> D_in = D_out = 32.
    D_in, H, D_out = 32, 64, 32

    key = jax.random.PRNGKey(0)
    kx, kp, kx2 = jax.random.split(key, 3)
    params = init_params(kp, D_in, H, D_out)

    # --- Case 1: tiny batch, f32 matmul path (exact vs reference) ---
    B = 8
    x = jax.random.normal(kx, (B, D_in), jnp.float32)
    y_ref = mlpnn_ref(x, params)
    prepped_f32, d_out = prepare_params(params, matmul_dtype=jnp.float32)
    y = jax.block_until_ready(mlpnn_forward(x, prepped_f32, d_out,
                                            out_dtype=jnp.float32))
    assert y.shape == (B, D_out)
    assert jnp.allclose(y, y_ref, atol=1e-5, rtol=1e-5)

    # --- Case 2: default bf16 matmul path, awkward batch (exercises batch padding
    #     + >= 2 parallel grid steps for v7x dual-TC) ---
    B2 = 20
    x2 = jax.random.normal(kx2, (B2, D_in), jnp.float32)
    y2_ref = mlpnn_ref(x2, params)
    prepped_bf16, _ = prepare_params(params)           # bf16 is the default
    y2 = jax.block_until_ready(mlpnn_forward(x2, prepped_bf16, d_out))
    assert y2.shape == (B2, D_out)
    assert jnp.allclose(y2, y2_ref, atol=1e-1, rtol=5e-2)

    # --- Case 3: bf16 output store, padded slab kept (no wrapper slice copy) ---
    y3 = jax.block_until_ready(
        mlpnn_forward(x2, prepped_bf16, d_out, out_dtype=jnp.bfloat16, unpad=False))
    assert y3.dtype == jnp.bfloat16
    assert y3.shape[1] % 128 == 0 and y3.shape[0] % 8 == 0
    assert jnp.allclose(y3[:B2, :d_out].astype(jnp.float32), y2_ref,
                        atol=1e-1, rtol=5e-2)

    print("KERNEL_OK")
</pallas_src>

<mosaic_0001>
module attributes {stable_mosaic.version = 11 : i64} {
  func.func @mlpnn_kernel(%arg0: i32, %arg1: memref<8x32xf32, #tpu.memory_space<vmem>>, %arg2: memref<32x128xf32, #tpu.memory_space<vmem>>, %arg3: memref<128x128xf32, #tpu.memory_space<vmem>>, %arg4: memref<128x128xf32, #tpu.memory_space<vmem>>, %arg5: memref<128x128xf32, #tpu.memory_space<vmem>>, %arg6: memref<8x128xf32, #tpu.memory_space<vmem>>, %arg7: memref<8x128xf32, #tpu.memory_space<vmem>>) attributes {dimension_semantics = [#tpu.dimension_semantics<parallel>], iteration_bounds = array<i64: 1>, scalar_prefetch = 0 : i64, scratch_operands = 0 : i64, tpu.core_type = #tpu.core_type<tc>, window_params = [{transform_indices = @transform_0, window_bounds = array<i64: 8, 32>}, {pipeline_mode = #tpu.pipeline_mode<synchronous>, transform_indices = @transform_1, window_bounds = array<i64: 32, 128>}, {pipeline_mode = #tpu.pipeline_mode<synchronous>, transform_indices = @transform_2, window_bounds = array<i64: 128, 128>}, {pipeline_mode = #tpu.pipeline_mode<synchronous>, transform_indices = @transform_3, window_bounds = array<i64: 128, 128>}, {pipeline_mode = #tpu.pipeline_mode<synchronous>, transform_indices = @transform_4, window_bounds = array<i64: 128, 128>}, {pipeline_mode = #tpu.pipeline_mode<synchronous>, transform_indices = @transform_5, window_bounds = array<i64: 8, 128>}, {transform_indices = @transform_6, window_bounds = array<i64: 8, 128>}]} {
    %c0 = arith.constant 0 : index
    %c0_0 = arith.constant 0 : index
    %0 = vector.load %arg1[%c0, %c0_0] : memref<8x32xf32, #tpu.memory_space<vmem>>, vector<8x32xf32>
    %cst = arith.constant 0.000000e+00 : f32
    %1 = vector.broadcast %cst : f32 to vector<8x32xf32>
    %2 = arith.maximumf %0, %1 : vector<8x32xf32>
    %c0_1 = arith.constant 0 : index
    %c0_2 = arith.constant 0 : index
    %3 = vector.load %arg2[%c0_1, %c0_2] : memref<32x128xf32, #tpu.memory_space<vmem>>, vector<32x128xf32>
    %cst_3 = arith.constant dense<0.000000e+00> : vector<8x128xf32>
    %4 = tpu.matmul %2, %3, %cst_3 {dimension_numbers = #tpu.dot_dimension_numbers<[1], [0], [0], [1], [0, 0, 1, 1], [], []>} : vector<8x32xf32>, vector<32x128xf32>, vector<8x128xf32> -> vector<8x128xf32>
    %c0_4 = arith.constant 0 : index
    %c0_5 = arith.constant 0 : index
    %5 = vector.load %arg6[%c0_4, %c0_5] : memref<8x128xf32, #tpu.memory_space<vmem>>, vector<1x128xf32>
    %6 = vector.broadcast %5 : vector<1x128xf32> to vector<8x128xf32>
    %7 = arith.addf %4, %6 : vector<8x128xf32>
    %cst_6 = arith.constant 0.000000e+00 : f32
    %8 = vector.broadcast %cst_6 : f32 to vector<8x128xf32>
    %9 = arith.maximumf %7, %8 : vector<8x128xf32>
    %c0_7 = arith.constant 0 : index
    %c0_8 = arith.constant 0 : index
    %10 = vector.load %arg3[%c0_7, %c0_8] : memref<128x128xf32, #tpu.memory_space<vmem>>, vector<128x128xf32>
    %cst_9 = arith.constant dense<0.000000e+00> : vector<8x128xf32>
    %11 = tpu.matmul %9, %10, %cst_9 {dimension_numbers = #tpu.dot_dimension_numbers<[1], [0], [0], [1], [0, 0, 1, 1], [], []>} : vector<8x128xf32>, vector<128x128xf32>, vector<8x128xf32> -> vector<8x128xf32>
    %c1 = arith.constant 1 : index
    %c0_10 = arith.constant 0 : index
    %12 = vector.load %arg6[%c1, %c0_10] : memref<8x128xf32, #tpu.memory_space<vmem>>, vector<1x128xf32>
    %13 = vector.broadcast %12 : vector<1x128xf32> to vector<8x128xf32>
    %14 = arith.addf %11, %13 : vector<8x128xf32>
    %cst_11 = arith.constant 0.000000e+00 : f32
    %15 = vector.broadcast %cst_11 : f32 to vector<8x128xf32>
    %16 = arith.maximumf %14, %15 : vector<8x128xf32>
    %c0_12 = arith.constant 0 : index
    %c0_13 = arith.constant 0 : index
    %17 = vector.load %arg4[%c0_12, %c0_13] : memref<128x128xf32, #tpu.memory_space<vmem>>, vector<128x128xf32>
    %cst_14 = arith.constant dense<0.000000e+00> : vector<8x128xf32>
    %18 = tpu.matmul %16, %17, %cst_14 {dimension_numbers = #tpu.dot_dimension_numbers<[1], [0], [0], [1], [0, 0, 1, 1], [], []>} : vector<8x128xf32>, vector<128x128xf32>, vector<8x128xf32> -> vector<8x128xf32>
    %c2 = arith.constant 2 : index
    %c0_15 = arith.constant 0 : index
    %19 = vector.load %arg6[%c2, %c0_15] : memref<8x128xf32, #tpu.memory_space<vmem>>, vector<1x128xf32>
    %20 = vector.broadcast %19 : vector<1x128xf32> to vector<8x128xf32>
    %21 = arith.addf %18, %20 : vector<8x128xf32>
    %22 = math.tanh %21 : vector<8x128xf32>
    %c0_16 = arith.constant 0 : index
    %c0_17 = arith.constant 0 : index
    %23 = vector.load %arg5[%c0_16, %c0_17] : memref<128x128xf32, #tpu.memory_space<vmem>>, vector<128x128xf32>
    %cst_18 = arith.constant dense<0.000000e+00> : vector<8x128xf32>
    %24 = tpu.matmul %22, %23, %cst_18 {dimension_numbers = #tpu.dot_dimension_numbers<[1], [0], [0], [1], [0, 0, 1, 1], [], []>} : vector<8x128xf32>, vector<128x128xf32>, vector<8x128xf32> -> vector<8x128xf32>
    %c3 = arith.constant 3 : index
    %c0_19 = arith.constant 0 : index
    %25 = vector.load %arg6[%c3, %c0_19] : memref<8x128xf32, #tpu.memory_space<vmem>>, vector<1x128xf32>
    %26 = vector.broadcast %25 : vector<1x128xf32> to vector<8x128xf32>
    %27 = arith.addf %24, %26 : vector<8x128xf32>
    %c0_20 = arith.constant 0 : index
    %c0_21 = arith.constant 0 : index
    %28 = vector.load %arg7[%c0_20, %c0_21] : memref<8x128xf32, #tpu.memory_space<vmem>>, vector<8x128xf32>
    tpu.vector_store %arg7[%c0_20, %c0_21], %27 {strides = array<i32>} : memref<8x128xf32, #tpu.memory_space<vmem>>, vector<8x128xf32>,
    return
  }
  func.func @transform_0(%arg0: i32) -> (i32, i32) {
    %c0_i32 = arith.constant 0 : i32
    %c0_i32_0 = arith.constant 0 : i32
    return %arg0, %c0_i32 : i32, i32
  }
  func.func @transform_1(%arg0: i32) -> (i32, i32) {
    %c0_i32 = arith.constant 0 : i32
    %c0_i32_0 = arith.constant 0 : i32
    %c0_i32_1 = arith.constant 0 : i32
    return %c0_i32, %c0_i32_0 : i32, i32
  }
  func.func @transform_2(%arg0: i32) -> (i32, i32) {
    %c0_i32 = arith.constant 0 : i32
    %c0_i32_0 = arith.constant 0 : i32
    %c0_i32_1 = arith.constant 0 : i32
    return %c0_i32, %c0_i32_0 : i32, i32
  }
  func.func @transform_3(%arg0: i32) -> (i32, i32) {
    %c0_i32 = arith.constant 0 : i32
    %c0_i32_0 = arith.constant 0 : i32
    %c0_i32_1 = arith.constant 0 : i32
    return %c0_i32, %c0_i32_0 : i32, i32
  }
  func.func @transform_4(%arg0: i32) -> (i32, i32) {
    %c0_i32 = arith.constant 0 : i32
    %c0_i32_0 = arith.constant 0 : i32
    %c0_i32_1 = arith.constant 0 : i32
    return %c0_i32, %c0_i32_0 : i32, i32
  }
  func.func @transform_5(%arg0: i32) -> (i32, i32) {
    %c0_i32 = arith.constant 0 : i32
    %c0_i32_0 = arith.constant 0 : i32
    %c0_i32_1 = arith.constant 0 : i32
    return %c0_i32, %c0_i32_0 : i32, i32
  }
  func.func @transform_6(%arg0: i32) -> (i32, i32) {
    %c0_i32 = arith.constant 0 : i32
    %c0_i32_0 = arith.constant 0 : i32
    return %arg0, %c0_i32 : i32, i32
  }
}

</mosaic_0001>

<bundles_post_ra>
// kernel: tpu_custom_call.1
= control target key start
LH: loop header
LB: loop body
LE: loop exit
PB: predicated region body
PF: predicated region fallthrough
CT: control target
= control target key end

     0   :  { %11 = vsyncpa [#allocation3], 0  ;;  %s1053_s0 = inlined_call_operand.hbm [shape: f32[8,32], index: 0, kind: input, shape index: {}]   ;;  %s1054_s1 = inlined_call_operand.hbm [shape: f32[32,128], index: 1, kind: input, shape index: {}]   ;;  %s1055_s2 = inlined_call_operand.hbm [shape: f32[128,128], index: 2, kind: input, shape index: {}]   ;;  %s1056_s3 = inlined_call_operand.hbm [shape: f32[128,128], index: 3, kind: input, shape index: {}]   ;;  %s1057_s4 = inlined_call_operand.hbm [shape: f32[128,128], index: 4, kind: input, shape index: {}]   ;;  %s1058_s5 = inlined_call_operand.vmem [shape: f32[8,128], index: 5, kind: input, shape index: {}]   ;;  %s1059_s6 = inlined_call_operand.hbm [shape: f32[8,128], index: 6, kind: output, shape index: {}]  }
   0x1   :  { %12 = vsyncpa [#allocation6], 0 }
   0x2   :  { %13 = vsyncpa [#allocation9], 0 }
   0x3   :  { %14 = vsyncpa [#allocation4], 0  ;;  %s877_s21 = smov [#allocation5]   ;;  %s737_s25 = scalar_lea.hbm %s1054_s1, 512 }
   0x4   :  { %s30_s22 = sshll.u32 %s877_s21, 4  ;;  %p738_p0 = scmp.ne.s32.totalorder %s1054_s1, %s737_s25  ;;  %s31_s22 = int_to_ptr.vmem [resolvable:$true] %s30_s22 }
   0x5   :  { %p741_p1 = scmp.lt.u32.totalorder %s737_s25, %s1054_s1 }
   0x7   :  { %p743_p2 = pnand %p741_p1, %p738_p0 }
   0x9   :  { %746 = shalt.err (!%p743_p2)
}
   0xa   :  { %s747_s30 = scalar_lea.vmem %s31_s22, 512  ;;  %p752_p4 = scmp.lt.s32.totalorder %s31_s22, %s31_s22 }
   0xb   :  { %p748_p3 = scmp.ne.s32.totalorder %s31_s22, %s747_s30  ;;  %p753_p5 = scmp.lt.s32.totalorder %s747_s30, %s747_s30 }
   0xd   :  { %p754_p6 = por %p753_p5, %p752_p4 }
   0xf   :  { %p755_p7 = pnand %p754_p6, %p748_p3 }
  0x11   :  { %758 = shalt.err (!%p755_p7)
}
  0x12   :  { %s878_s7 = smov 128   ;;  %s879_s8 = smov 8  }
  0x13   :  { %36 = dma.hbm_to_vmem [thread:$0]  %s1054_s1, 512, %s31_s22, [#allocation6], %s878_s7, %s878_s7, %s879_s8  }
  0x14   :  { %s880_s11 = smov [#allocation8]   ;;  %s881_s13 = smov [#allocation2]  }
  0x15   :  { %s54_s12 = sshll.u32 %s880_s11, 4  ;;  %s21_s14 = sshll.u32 %s881_s13, 4  ;;  %s55_s12 = int_to_ptr.vmem [resolvable:$true] %s54_s12  ;;  %s22_s14 = int_to_ptr.vmem [resolvable:$true] %s21_s14 }
  0x16   :  { %s759_s17 = scalar_lea.hbm %s1056_s3, 2048 }
  0x17   :  { %p760_p8 = scmp.ne.s32.totalorder %s1056_s3, %s759_s17  ;;  %p763_p9 = scmp.lt.u32.totalorder %s759_s17, %s1056_s3 }
  0x19   :  { %p765_p10 = pnand %p763_p9, %p760_p8 }
  0x1b   :  { %768 = shalt.err (!%p765_p10)
}
  0x1c   :  { %s769_s1 = scalar_lea.vmem %s55_s12, 2048  ;;  %p774_p12 = scmp.lt.s32.totalorder %s55_s12, %s55_s12 }
  0x1d   :  { %p770_p11 = scmp.ne.s32.totalorder %s55_s12, %s769_s1  ;;  %p775_p13 = scmp.lt.s32.totalorder %s769_s1, %s769_s1 }
  0x1f   :  { %p776_p0 = por %p775_p13, %p774_p12 }
  0x21   :  { %p777_p1 = pnand %p776_p0, %p770_p11 }
  0x23   :  { %780 = shalt.err (!%p777_p1)
}
  0x24   :  { %60 = dma.hbm_to_vmem [thread:$0]  %s1056_s3, 2048, %s55_s12, [#allocation9], %s878_s7, %s878_s7, %s879_s8  }
  0x25   :  { %s781_s26 = scalar_lea.hbm %s1053_s0, 128 }
  0x26   :  { %p782_p2 = scmp.ne.s32.totalorder %s1053_s0, %s781_s26  ;;  %p785_p3 = scmp.lt.u32.totalorder %s781_s26, %s1053_s0 }
  0x28   :  { %p787_p4 = pnand %p785_p3, %p782_p2 }
  0x2a   :  { %790 = shalt.err (!%p787_p4)
}
  0x2b   :  { %s791_s9 = scalar_lea.vmem %s22_s14, 128  ;;  %p796_p6 = scmp.lt.s32.totalorder %s22_s14, %s22_s14 }
  0x2c   :  { %p792_p5 = scmp.ne.s32.totalorder %s22_s14, %s791_s9  ;;  %p797_p7 = scmp.lt.s32.totalorder %s791_s9, %s791_s9 }
  0x2e   :  { %p798_p8 = por %p797_p7, %p796_p6 }
  0x30   :  { %p799_p9 = pnand %p798_p8, %p792_p5 }
  0x32   :  { %802 = shalt.err (!%p799_p9)
}
  0x33   :  { %24 = dma.hbm_to_vmem [thread:$0]  %s1053_s0, 128, %s22_s14, [#allocation3]  }
  0x34   :  { %s882_s11 = smov [#allocation7]   ;;  %s883_s13 = smov [#allocation10]  }
  0x35   :  { %s42_s12 = sshll.u32 %s882_s11, 4  ;;  %s66_s15 = sshll.u32 %s883_s13, 4  ;;  %s43_s12 = int_to_ptr.vmem [resolvable:$true] %s42_s12  ;;  %s67_s15 = int_to_ptr.vmem [resolvable:$true] %s66_s15 }
  0x36   :  { %s803_s18 = scalar_lea.hbm %s1055_s2, 2048 }
  0x37   :  { %p804_p10 = scmp.ne.s32.totalorder %s1055_s2, %s803_s18  ;;  %p807_p11 = scmp.lt.u32.totalorder %s803_s18, %s1055_s2 }
  0x39   :  { %p809_p12 = pnand %p807_p11, %p804_p10 }
  0x3b   :  { %812 = shalt.err (!%p809_p12)
}
  0x3c   :  { %s813_s0 = scalar_lea.vmem %s43_s12, 2048  ;;  %p818_p0 = scmp.lt.s32.totalorder %s43_s12, %s43_s12 }
  0x3d   :  { %p814_p13 = scmp.ne.s32.totalorder %s43_s12, %s813_s0  ;;  %p819_p1 = scmp.lt.s32.totalorder %s813_s0, %s813_s0 }
  0x3f   :  { %p820_p2 = por %p819_p1, %p818_p0 }
  0x41   :  { %p821_p3 = pnand %p820_p2, %p814_p13 }
  0x43   :  { %824 = shalt.err (!%p821_p3)
}
  0x44   :  { %48 = dma.hbm_to_vmem [thread:$0]  %s1055_s2, 2048, %s43_s12, [#allocation6], %s878_s7, %s878_s7, %s879_s8  }
  0x45   :  { %s825_s25 = scalar_lea.hbm %s1057_s4, 2048 }
  0x46   :  { %p826_p4 = scmp.ne.s32.totalorder %s1057_s4, %s825_s25  ;;  %p829_p5 = scmp.lt.u32.totalorder %s825_s25, %s1057_s4 }
  0x48   :  { %p831_p6 = pnand %p829_p5, %p826_p4 }
  0x4a   :  { %834 = shalt.err (!%p831_p6)
}
  0x4b   :  { %s835_s30 = scalar_lea.vmem %s67_s15, 2048  ;;  %p840_p8 = scmp.lt.s32.totalorder %s67_s15, %s67_s15 }
  0x4c   :  { %p836_p7 = scmp.ne.s32.totalorder %s67_s15, %s835_s30  ;;  %p841_p9 = scmp.lt.s32.totalorder %s835_s30, %s835_s30 }
  0x4e   :  { %p842_p10 = por %p841_p9, %p840_p8 }
  0x50   :  { %p843_p11 = pnand %p842_p10, %p836_p7 }
  0x52   :  { %846 = shalt.err (!%p843_p11)
}
  0x53   :  { %72 = dma.hbm_to_vmem [thread:$0]  %s1057_s4, 2048, %s67_s15, [#allocation9], %s878_s7, %s878_s7, %s879_s8  }
  0x54   :  { %869 = dma.done.wait [#allocation3], 128  }
  0x55   :  { %870 = vsyncadd [#allocation3], 4294967168 }
  0x56   :  { %871 = dma.done.wait [#allocation6], 2560  }
  0x57   :  { %872 = vsyncadd [#allocation6], 4294964736 }
  0x58   :  { %873 = dma.done.wait [#allocation9], 4096  }
  0x59   :  { %874 = vsyncadd [#allocation9], 4294963200  ;;  %v884_v0 = vmov 0.0|0.0   ;;  %vm885_vm0 = vmmov 0   ;;  %v886_v1 = vmov 0.0   ;;  %v92_v2 = vld [vmem:[#allocation5] sm:$0xff] }
  0x5a   :  { %646 = vmatprep.subr.bf16.mxu0 %v884_v0  ;;  %538 = vmatprep.mubr.msk.f32.mxu0 %vm885_vm0, %v886_v1  ;;  %v93_v3 = vld [vmem:[#allocation5 + $0x8] sm:$0xff]  ;;  %v94_v4 = vld [vmem:[#allocation5 + $0x10] sm:$0xff]  ;;  %v95_v6 = vld [vmem:[#allocation5 + $0x18] sm:$0xff]  ;;  %vm101_vm1 = vcmask 261120   ;;  %s887_s15 = smov [#allocation11]  }
  0x5b   :  { %652 = vmatprep.subr.bf16.mxu1 %v884_v0  ;;  %573 = vmatprep.mubr.msk.f32.mxu1 %vm885_vm0, %v886_v1  ;;  %v647_v5 = vpack.c.bf16 %v93_v3, %v92_v2  ;;  %v176_v7 = vld [vmem:[#allocation7] sm:$0xff]  ;;  %v177_v8 = vld [vmem:[#allocation7 + $0x8] sm:$0xff]  ;;  %v178_v9 = vld [vmem:[#allocation7 + $0x10] sm:$0xff]  ;;  %v650_v11 = vpack.c.bf16 %v95_v6, %v94_v4  ;;  %s458_s16 = sshll.u32 %s887_s15, 4  ;;  %s459_s16 = int_to_ptr.vmem [resolvable:$true] %s458_s16 }
  0x5c   :  { %v179_v10 = vld [vmem:[#allocation7 + $0x18] sm:$0xff]  ;;  %v653_v13 = vpack.c.bf16 %v177_v8, %v176_v7  ;;  %v180_v16 = vld [vmem:[#allocation7 + $0x20] sm:$0xff]  ;;  %v181_v17 = vld [vmem:[#allocation7 + $0x28] sm:$0xff]  ;;  %s847_s17 = scalar_lea.vmem %s459_s16, 128  ;;  %p852_p13 = scmp.lt.s32.totalorder %s459_s16, %s459_s16 }
  0x5d   :  { %648 = vmatpush3.bf16.msra.mxu0 %v647_v5  ;;  %v90_v12 = vld [vmem:[#allocation2] sm:$0xff]  ;;  %v656_v14 = vpack.c.bf16 %v179_v10, %v178_v9  ;;  %v659_v18 = vpack.c.bf16 %v181_v17, %v180_v16  ;;  %v182_v19 = vld [vmem:[#allocation7 + $0x30] sm:$0xff]  ;;  %v184_v22 = vld [vmem:[#allocation7 + $0x40] sm:$0xff]  ;;  %p848_p12 = scmp.ne.s32.totalorder %s459_s16, %s847_s17  ;;  %p853_p0 = scmp.lt.s32.totalorder %s847_s17, %s847_s17 }
  0x5e   :  { %649 = vmatprep.subr.bf16.mxu0 %v884_v0  ;;  %654 = vmatpush3.bf16.msra.mxu1 %v653_v13  ;;  %v91_v15 = vmax.f32 %v90_v12, 0.0  ;;  %v183_v20 = vld [vmem:[#allocation7 + $0x38] sm:$0xff]  ;;  %v185_v23 = vld [vmem:[#allocation7 + $0x48] sm:$0xff]  ;;  %v186_v25 = vld [vmem:[#allocation7 + $0x50] sm:$0xff] }
  0x5f   :  { %655 = vmatprep.subr.bf16.mxu1 %v884_v0  ;;  %v662_v21 = vpack.c.bf16 %v183_v20, %v182_v19  ;;  %v665_v24 = vpack.c.bf16 %v185_v23, %v184_v22  ;;  %v187_v26 = vld [vmem:[#allocation7 + $0x58] sm:$0xff]  ;;  %v188_v28 = vld [vmem:[#allocation7 + $0x60] sm:$0xff]  ;;  %v189_v29 = vld [vmem:[#allocation7 + $0x68] sm:$0xff]  ;;  %p854_p1 = por %p853_p0, %p852_p13 }
  0x60   :  { %v668_v27 = vpack.c.bf16 %v187_v26, %v186_v25  ;;  %v671_v30 = vpack.c.bf16 %v189_v29, %v188_v28  ;;  %v190_v31 = vld [vmem:[#allocation7 + $0x70] sm:$0xff]  ;;  %v191_v32 = vld [vmem:[#allocation7 + $0x78] sm:$0xff]  ;;  %v268_v34 = vld [vmem:[#allocation8] sm:$0xff] }
  0x61   :  { %651 = vmatpush3.bf16.msra.mxu0 %v650_v11  ;;  %v674_v33 = vpack.c.bf16 %v191_v32, %v190_v31  ;;  %v269_v35 = vld [vmem:[#allocation8 + $0x8] sm:$0xff]  ;;  %v270_v36 = vld [vmem:[#allocation8 + $0x10] sm:$0xff]  ;;  %v271_v38 = vld [vmem:[#allocation8 + $0x18] sm:$0xff]  ;;  %p855_p2 = pnand %p854_p1, %p848_p12 }
  0x62   :  { %676 = vmatprep.subr.bf16.mxu0 %v884_v0  ;;  %657 = vmatpush3.bf16.msra.mxu1 %v656_v14  ;;  %v677_v37 = vpack.c.bf16 %v269_v35, %v268_v34  ;;  %v680_v39 = vpack.c.bf16 %v271_v38, %v270_v36  ;;  %v272_v40 = vld [vmem:[#allocation8 + $0x20] sm:$0xff]  ;;  %v273_v41 = vld [vmem:[#allocation8 + $0x28] sm:$0xff]  ;;  %v274_v43 = vld [vmem:[#allocation8 + $0x30] sm:$0xff] }
  0x63   :  { %658 = vmatprep.subr.bf16.mxu1 %v884_v0  ;;  %v683_v42 = vpack.c.bf16 %v273_v41, %v272_v40  ;;  %v275_v44 = vld [vmem:[#allocation8 + $0x38] sm:$0xff]  ;;  %v276_v46 = vld [vmem:[#allocation8 + $0x40] sm:$0xff]  ;;  %v277_v47 = vld [vmem:[#allocation8 + $0x48] sm:$0xff] }
  0x64   :  { %539 = vmatmul.mubr.msk.f32.vlgmr.msra.gmra.mrb[0].mxu0 %vm101_vm1, %v91_v15  ;;  %v686_v45 = vpack.c.bf16 %v275_v44, %v274_v43  ;;  %v689_v48 = vpack.c.bf16 %v277_v47, %v276_v46  ;;  %v278_v49 = vld [vmem:[#allocation8 + $0x50] sm:$0xff]  ;;  %v279_v50 = vld [vmem:[#allocation8 + $0x58] sm:$0xff]  ;;  %v280_v52 = vld [vmem:[#allocation8 + $0x60] sm:$0xff] }
  0x65   :  { %608 = vmatprep.mubr.msk.f32.mxu0 %vm885_vm0, %v886_v1  ;;  %678 = vmatpush3.bf16.msra.mxu0 %v677_v37  ;;  %v692_v51 = vpack.c.bf16 %v279_v50, %v278_v49  ;;  %v281_v53 = vld [vmem:[#allocation8 + $0x68] sm:$0xff]  ;;  %v469_v55 = vld [vmem:[%s1058_s5] ss:$0 sm:$0xff]  ;;  %v282_v60 = vld [vmem:[#allocation8 + $0x70] sm:$0xff] }
  0x66   :  { %660 = vmatpush3.bf16.msra.mxu1 %v659_v18  ;;  %679 = vmatprep.subr.bf16.mxu0 %v884_v0  ;;  %v695_v54 = vpack.c.bf16 %v281_v53, %v280_v52  ;;  %v283_v61 = vld [vmem:[#allocation8 + $0x78] sm:$0xff]  ;;  %v360_v63 = vld [vmem:[#allocation10] sm:$0xff]  ;;  %v361_v2 = vld [vmem:[#allocation10 + $0x8] sm:$0xff] }
  0x67   :  { %661 = vmatprep.subr.bf16.mxu1 %v884_v0  ;;  %v698_v62 = vpack.c.bf16 %v283_v61, %v282_v60  ;;  %v362_v3 = vld [vmem:[#allocation10 + $0x10] sm:$0xff]  ;;  %v701_v4 = vpack.c.bf16 %v361_v2, %v360_v63  ;;  %v363_v5 = vld [vmem:[#allocation10 + $0x18] sm:$0xff]  ;;  %v364_v7 = vld [vmem:[#allocation10 + $0x20] sm:$0xff] }
  0x68   :  { %v704_v6 = vpack.c.bf16 %v363_v5, %v362_v3  ;;  %v365_v8 = vld [vmem:[#allocation10 + $0x28] sm:$0xff]  ;;  %v367_v10 = vld [vmem:[#allocation10 + $0x38] sm:$0xff]  ;;  %v368_v12 = vld [vmem:[#allocation10 + $0x40] sm:$0xff] }
  0x69   :  { %681 = vmatpush3.bf16.msra.mxu0 %v680_v39  ;;  %v707_v9 = vpack.c.bf16 %v365_v8, %v364_v7  ;;  %v369_v13 = vld [vmem:[#allocation10 + $0x48] sm:$0xff]  ;;  %v471_v15 = vld [vmem:[%s1058_s5 + $0x1] ss:$0 sm:$0xff]  ;;  %v370_v20 = vld [vmem:[#allocation10 + $0x50] sm:$0xff] }
  0x6a   :  { %663 = vmatpush3.bf16.msra.mxu1 %v662_v21  ;;  %682 = vmatprep.subr.bf16.mxu0 %v884_v0  ;;  %v713_v14 = vpack.c.bf16 %v369_v13, %v368_v12  ;;  %v371_v21 = vld [vmem:[#allocation10 + $0x58] sm:$0xff]  ;;  %v372_v23 = vld [vmem:[#allocation10 + $0x60] sm:$0xff]  ;;  %v374_v26 = vld [vmem:[#allocation10 + $0x70] sm:$0xff] }
  0x6b   :  { %664 = vmatprep.subr.bf16.mxu1 %v884_v0  ;;  %v716_v22 = vpack.c.bf16 %v371_v21, %v370_v20  ;;  %v472_v29 = vld [vmem:[%s1058_s5 + $0x2] ss:$0 sm:$0xff]  ;;  %v473_v34 = vld [vmem:[%s1058_s5 + $0x3] ss:$0 sm:$0xff] }
  0x6d   :  { %684 = vmatpush3.bf16.msra.mxu0 %v683_v42 }
  0x6e   :  { %666 = vmatpush3.bf16.msra.mxu1 %v665_v24  ;;  %685 = vmatprep.subr.bf16.mxu0 %v884_v0  ;;  %v373_v24 = vld [vmem:[#allocation10 + $0x68] sm:$0xff] }
  0x6f   :  { %667 = vmatprep.subr.bf16.mxu1 %v884_v0  ;;  %v719_v25 = vpack.c.bf16 %v373_v24, %v372_v23 }
  0x71   :  { %687 = vmatpush3.bf16.msra.mxu0 %v686_v45 }
  0x72   :  { %669 = vmatpush3.bf16.msra.mxu1 %v668_v27  ;;  %688 = vmatprep.subr.bf16.mxu0 %v884_v0  ;;  %v375_v27 = vld [vmem:[#allocation10 + $0x78] sm:$0xff] }
  0x73   :  { %670 = vmatprep.subr.bf16.mxu1 %v884_v0  ;;  %v722_v28 = vpack.c.bf16 %v375_v27, %v374_v26 }
  0x75   :  { %690 = vmatpush3.bf16.msra.mxu0 %v689_v48 }
  0x76   :  { %672 = vmatpush3.bf16.msra.mxu1 %v671_v30  ;;  %691 = vmatprep.subr.bf16.mxu0 %v884_v0 }
  0x77   :  { %673 = vmatprep.subr.bf16.mxu1 %v884_v0 }
  0x79   :  { %693 = vmatpush3.bf16.msra.mxu0 %v692_v51 }
  0x7a   :  { %675 = vmatpush3.bf16.msra.mxu1 %v674_v33  ;;  %694 = vmatprep.subr.bf16.mxu0 %v884_v0 }
  0x7b   :  { %700 = vmatprep.subr.bf16.mxu1 %v884_v0 }
  0x7d   :  { %696 = vmatpush3.bf16.msra.mxu0 %v695_v54 }
  0x7e   :  { %697 = vmatprep.subr.bf16.mxu0 %v884_v0 }
  0x81   :  { %699 = vmatpush3.bf16.msra.mxu0 %v698_v62 }
 0x137   :  { %v171_v56 = vpop.f32.mrb[0].mxu0 }
 0x138   :  { %v172_v57 = vadd.f32 %v469_v55, %v171_v56  ;;  %v540_v58 = vpop.f32.mrb[1].mxu0 }
 0x13a   :  { %v175_v59 = vmax.f32 %v172_v57, 0.0 }
 0x13c   :  { %574 = vmatmul.mubr.f32.vlgmr.msra.gmra.mrb[0].mxu1 %v175_v59 }
 0x13d   :  { %643 = vmatprep.mubr.msk.f32.mxu1 %vm885_vm0, %v886_v1  ;;  %702 = vmatpush3.bf16.msra.mxu1 %v701_v4  ;;  %v366_v1 = vld [vmem:[#allocation10 + $0x30] sm:$0xff] }
 0x13e   :  { %703 = vmatprep.subr.bf16.mxu1 %v884_v0  ;;  %v710_v11 = vpack.c.bf16 %v367_v10, %v366_v1 }
 0x141   :  { %705 = vmatpush3.bf16.msra.mxu1 %v704_v6 }
 0x142   :  { %706 = vmatprep.subr.bf16.mxu1 %v884_v0 }
 0x145   :  { %708 = vmatpush3.bf16.msra.mxu1 %v707_v9 }
 0x146   :  { %709 = vmatprep.subr.bf16.mxu1 %v884_v0 }
 0x149   :  { %711 = vmatpush3.bf16.msra.mxu1 %v710_v11 }
 0x14a   :  { %712 = vmatprep.subr.bf16.mxu1 %v884_v0 }
 0x14d   :  { %714 = vmatpush3.bf16.msra.mxu1 %v713_v14 }
 0x14e   :  { %715 = vmatprep.subr.bf16.mxu1 %v884_v0 }
 0x151   :  { %717 = vmatpush3.bf16.msra.mxu1 %v716_v22 }
 0x152   :  { %718 = vmatprep.subr.bf16.mxu1 %v884_v0 }
 0x155   :  { %720 = vmatpush3.bf16.msra.mxu1 %v719_v25 }
 0x156   :  { %721 = vmatprep.subr.bf16.mxu1 %v884_v0 }
 0x159   :  { %723 = vmatpush3.bf16.msra.mxu1 %v722_v28 }
 0x20f   :  { %v263_v16 = vpop.f32.mrb[0].mxu1 }
 0x210   :  { %v264_v17 = vadd.f32 %v471_v15, %v263_v16  ;;  %v575_v18 = vpop.f32.mrb[1].mxu1 }
 0x212   :  { %v267_v19 = vmax.f32 %v264_v17, 0.0 }
 0x214   :  { %609 = vmatmul.mubr.f32.vlgmr.msra.gmra.mrb[2].mxu0 %v267_v19 }
 0x2e7   :  { %v355_v30 = vpop.f32.mrb[2].mxu0 }
 0x2e8   :  { %v356_v31 = vadd.f32 %v472_v29, %v355_v30  ;;  %v610_v32 = vpop.f32.mrb[3].mxu0 }
 0x2ea   :  { %735 = vtanh.f32 %v356_v31 }
 0x2f4   :  { %v736_v33 = vpop.eup %735 }
 0x2f5   :  { %644 = vmatmul.mubr.f32.vlgmr.msra.gmra.mrb[2].mxu1 %v736_v33 }
 0x3c8   :  { %v447_v35 = vpop.f32.mrb[2].mxu1 }
 0x3c9   :  { %v448_v36 = vadd.f32 %v473_v34, %v447_v35  ;;  %v645_v0 = vpop.f32.mrb[3].mxu1 }
 0x3cb   :  { %451 = vst [vmem:[#allocation11] sm:$0xff] %v448_v36 }
 0x3cc   :  { %858 = shalt.err (!%p855_p2)
}
 0x3cd   :  { %s859_s20 = scalar_lea.hbm %s1059_s6, 128 }
 0x3ce   :  { %p860_p3 = scmp.ne.s32.totalorder %s1059_s6, %s859_s20  ;;  %p863_p4 = scmp.lt.u32.totalorder %s859_s20, %s1059_s6 }
 0x3d0   :  { %p865_p5 = pnand %p863_p4, %p860_p3 }
 0x3d2   :  { %868 = shalt.err (!%p865_p5)
}
 0x3d3   :  { %461 = dma.vmem_to_hbm [thread:$0]  %s459_s16, 128, %s1059_s6, [#allocation4]  }
 0x3d4   :  { %875 = dma.done.wait [#allocation4], 128  }
 0x3d5   :  { %876 = vsyncadd [#allocation4], 4294967168 }
 0x3d6   :  { %465 = vsyncpa [#allocation3], 1 }
 0x3d7   :  { %466 = vsyncpa [#allocation6], 1 }
 0x3d8   :  { %467 = vsyncpa [#allocation9], 1 }
 0x3d9   :  { %468 = vsyncpa [#allocation4], 1 }

</bundles_post_ra>
